<compile_context>
chip_gen: v7x
topology: tpu7x:2x2x1
jax: 0.10.0
libtpu: 0.0.40
codegen_flags: <defaults>
</compile_context>

<pallas_src>
import functools

import jax
import jax.numpy as jnp
from jax.experimental import pallas as pl
from jax.experimental.pallas import tpu as pltpu


def _short_conv_kernel(x_ref, w_ref, y_ref, carry_ref, *, W, Wc, tL, multi_l):
    """One (batch, d-tile, l-tile) step of the depthwise causal conv + SiLU.

    x_ref:     (tL, tD)  raw input tile (batch dim squeezed)
    w_ref:     (W,  tD)  depthwise taps; w_ref[j, d] == torch weight[d, 0, j]
    y_ref:     (tL, tD)  output tile
    carry_ref: (Wc, tD)  last Wc raw rows of the previous time tile (causal halo)
    """
    li = pl.program_id(2)

    # First time tile of each (batch, d-tile): causal halo is all zeros.
    @pl.when(li == 0)
    def _():
        carry_ref[...] = jnp.zeros_like(carry_ref)

    x_raw = x_ref[...]
    xf = x_raw.astype(jnp.float32)
    cf = carry_ref[...].astype(jnp.float32)
    w = w_ref[...].astype(jnp.float32)

    # Halo-extended tile. Both pieces have multiple-of-8 sublane counts, so the
    # concat is aligned; only the small per-tap shifted reads below are sub-8
    # offsets, and those stay entirely inside VMEM (no HBM cost).
    xp = jnp.concatenate([cf, xf], axis=0)            # (Wc + tL, tD)

    base = Wc - (W - 1)
    # Weight rows are (1, tD) and broadcast along sublanes inside the multiply;
    # no materialized (tL, tD) weight broadcast per tap.
    acc = xp[base:base + tL, :] * w[0:1, :]            # oldest tap
    for j in range(1, W):                              # static tiny unroll (W ~ 4)
        acc = acc + xp[base + j:base + j + tL, :] * w[j:j + 1, :]

    y = acc * jax.nn.sigmoid(acc)                      # SiLU (EUP)
    y_ref[...] = y.astype(y_ref.dtype)

    if multi_l:
        # Carry the last Wc raw rows for the next time tile (aligned slice).
        carry_ref[...] = x_raw[tL - Wc:, :]


def _choose_tile(n, target, align):
    """Largest multiple of `align` <= target that divides n; else n (full dim)."""
    if n <= target:
        return n
    t = (target // align) * align
    while t >= align:
        if n % t == 0:
            return t
        t -= align
    return n


def qkv_parallel_convolution(x, weight, *, conv_size, qk_size, v_size,
                             tile_l=None, tile_d=None):
    """x: (B, L, D); weight: (D, W) (torch Conv1d weight squeezed).

    Returns (q, k, v, cache): q,k (B, L, qk_size), v (B, L, v_size),
    cache (B, D, W).
    """
    B, L, D = x.shape
    W = conv_size
    assert weight.shape == (D, W)
    assert 2 * qk_size + v_size == D

    Wc = max(8, ((W - 1 + 7) // 8) * 8)      # halo rows carried (sublane aligned)

    tD = tile_d if tile_d is not None else _choose_tile(D, 512, 128)
    tL = tile_l if tile_l is not None else _choose_tile(L, 1024, 8)
    assert D % tD == 0 and (tD == D or tD % 128 == 0)
    assert L % tL == 0 and (tL == L or tL % 8 == 0)
    if L // tL > 1 and tL < Wc:
        tL = L                               # halo must fit in one previous tile
    nD, nL = D // tD, L // tL

    w_t = jnp.transpose(weight, (1, 0))      # (W, D): tap-major, channels on lanes

    kernel = functools.partial(_short_conv_kernel, W=W, Wc=Wc, tL=tL,
                               multi_l=(nL > 1))

    y = pl.pallas_call(
        kernel,
        out_shape=jax.ShapeDtypeStruct((B, L, D), x.dtype),
        grid_spec=pltpu.PrefetchScalarGridSpec(
            num_scalar_prefetch=0,
            grid=(B, nD, nL),                # time innermost (sequential carry)
            in_specs=[
                pl.BlockSpec((None, tL, tD), lambda b, di, li: (b, li, di)),
                pl.BlockSpec((W, tD), lambda b, di, li: (0, di)),
            ],
            out_specs=pl.BlockSpec((None, tL, tD), lambda b, di, li: (b, li, di)),
            scratch_shapes=[pltpu.VMEM((Wc, tD), x.dtype)],
        ),
        compiler_params=pltpu.CompilerParams(
            dimension_semantics=("parallel", "parallel", "arbitrary")),
    )(x, w_t)

    # Final conv state (only B*D*W elements): computed from x directly, outside
    # the kernel — in-kernel it would be a lane-sparse (last dim W=4) masked
    # store plus an XLU transpose.
    # TODO(synk): if the caller owns a persistent cache buffer, write it in-place
    # via input_output_aliases instead of returning a fresh array.
    if L >= W:
        tail = x[:, L - W:, :]
    else:
        tail = jnp.pad(x, ((0, 0), (W - L, 0), (0, 0)))
    cache = jnp.transpose(tail, (0, 2, 1))   # (B, D, W)

    q = y[..., :qk_size]
    k = y[..., qk_size:2 * qk_size]
    v = y[..., 2 * qk_size:]
    return q, k, v, cache


def _reference(x, weight, conv_size):
    """Pure-JAX reference: depthwise causal conv + SiLU + final conv state."""
    B, L, D = x.shape
    W = conv_size
    xp = jnp.pad(x, ((0, 0), (W - 1, 0), (0, 0)))
    acc = jnp.zeros((B, L, D), jnp.float32)
    for j in range(W):
        acc = acc + xp[:, j:j + L, :] * weight[:, j][None, None, :]
    y = (acc * jax.nn.sigmoid(acc)).astype(x.dtype)
    cache = jnp.transpose(xp[:, L - 1:L - 1 + W, :], (0, 2, 1))
    return y, cache


if __name__ == "__main__":
    # Module hyper-params (tp_size = 1): D = 4 * num_heads * head_size
    num_heads = 8
    head_size = 8
    conv_size = 4
    D = 4 * num_heads * head_size           # 256
    qk_size = num_heads * head_size         # 64
    v_size = 2 * num_heads * head_size      # 128

    B, L = 2, 16

    key = jax.random.PRNGKey(0)
    kx, kw = jax.random.split(key)
    x = jax.random.normal(kx, (B, L, D), dtype=jnp.float32)
    # Deterministic weight, analogous to Conv1d weight of shape (D, 1, W).
    weight = (jax.random.normal(kw, (D, conv_size), dtype=jnp.float32)
              / jnp.sqrt(conv_size))

    y_ref, cache_ref = _reference(x, weight, conv_size)

    # 1) Tiled path: exercises the D-tiling, L-tiling and the causal halo carry.
    q, k, v, cache = qkv_parallel_convolution(
        x, weight, conv_size=conv_size, qk_size=qk_size, v_size=v_size,
        tile_l=8, tile_d=128)
    jax.block_until_ready((q, k, v, cache))
    y_kernel = jnp.concatenate([q, k, v], axis=-1)
    assert jnp.allclose(y_kernel, y_ref, atol=1e-5, rtol=1e-5)
    assert jnp.allclose(cache, cache_ref, atol=1e-5, rtol=1e-5)
    assert q.shape == (B, L, qk_size)
    assert k.shape == (B, L, qk_size)
    assert v.shape == (B, L, v_size)
    assert cache.shape == (B, D, conv_size)

    # 2) Auto-tiled path (single tile per batch at this small shape).
    q2, k2, v2, cache2 = qkv_parallel_convolution(
        x, weight, conv_size=conv_size, qk_size=qk_size, v_size=v_size)
    jax.block_until_ready((q2, k2, v2, cache2))
    y_kernel2 = jnp.concatenate([q2, k2, v2], axis=-1)
    assert jnp.allclose(y_kernel2, y_ref, atol=1e-5, rtol=1e-5)
    assert jnp.allclose(cache2, cache_ref, atol=1e-5, rtol=1e-5)

    print("KERNEL_OK")
</pallas_src>

<mosaic_0001>
module attributes {stable_mosaic.version = 11 : i64} {
  func.func @_short_conv_kernel(%arg0: i32, %arg1: i32, %arg2: i32, %arg3: memref<1x8x128xf32, #tpu.memory_space<vmem>>, %arg4: memref<4x128xf32, #tpu.memory_space<vmem>>, %arg5: memref<1x8x128xf32, #tpu.memory_space<vmem>>, %arg6: memref<8x128xf32, #tpu.memory_space<vmem>>) attributes {dimension_semantics = [#tpu.dimension_semantics<parallel>, #tpu.dimension_semantics<parallel>, #tpu.dimension_semantics<arbitrary>], iteration_bounds = array<i64: 2, 2, 2>, scalar_prefetch = 0 : i64, scratch_operands = 1 : i64, tpu.core_type = #tpu.core_type<tc>, window_params = [{transform_indices = @transform_0, window_bounds = array<i64: 1, 8, 128>}, {transform_indices = @transform_1, window_bounds = array<i64: 4, 128>}, {transform_indices = @transform_2, window_bounds = array<i64: 1, 8, 128>}]} {
    %c0_i32 = arith.constant 0 : i32
    %0 = arith.cmpi eq, %arg2, %c0_i32 : i32
    %1 = arith.extui %0 : i1 to i32
    %c0_i32_0 = arith.constant 0 : i32
    %2 = arith.cmpi ne, %1, %c0_i32_0 : i32
    scf.if %2 {
      %cst_12 = arith.constant 0.000000e+00 : f32
      %37 = vector.broadcast %cst_12 : f32 to vector<8x128xf32>
      %c0_13 = arith.constant 0 : index
      %c0_14 = arith.constant 0 : index
      %38 = vector.load %arg6[%c0_13, %c0_14] : memref<8x128xf32, #tpu.memory_space<vmem>>, vector<8x128xf32>
      tpu.vector_store %arg6[%c0_13, %c0_14], %37 {strides = array<i32>} : memref<8x128xf32, #tpu.memory_space<vmem>>, vector<8x128xf32>,
    } else {
    }
    %c0 = arith.constant 0 : index
    %c0_1 = arith.constant 0 : index
    %c0_2 = arith.constant 0 : index
    %3 = vector.load %arg3[%c0, %c0_1, %c0_2] : memref<1x8x128xf32, #tpu.memory_space<vmem>>, vector<1x8x128xf32>
    %4 = vector.shape_cast %3 : vector<1x8x128xf32> to vector<8x128xf32>
    %c0_3 = arith.constant 0 : index
    %c0_4 = arith.constant 0 : index
    %5 = vector.load %arg6[%c0_3, %c0_4] : memref<8x128xf32, #tpu.memory_space<vmem>>, vector<8x128xf32>
    %c0_5 = arith.constant 0 : index
    %c0_6 = arith.constant 0 : index
    %6 = vector.load %arg4[%c0_5, %c0_6] : memref<4x128xf32, #tpu.memory_space<vmem>>, vector<4x128xf32>
    %7 = tpu.concatenate %5, %4 in 0 : vector<8x128xf32>, vector<8x128xf32> -> vector<16x128xf32>
    %8 = vector.extract_strided_slice %7 {offsets = [5, 0], sizes = [8, 128], strides = [1, 1]} : vector<16x128xf32> to vector<8x128xf32>
    %9 = vector.extract_strided_slice %6 {offsets = [0, 0], sizes = [1, 128], strides = [1, 1]} : vector<4x128xf32> to vector<1x128xf32>
    %10 = vector.broadcast %9 : vector<1x128xf32> to vector<8x128xf32>
    %11 = arith.mulf %8, %10 : vector<8x128xf32>
    %12 = vector.extract_strided_slice %7 {offsets = [6, 0], sizes = [8, 128], strides = [1, 1]} : vector<16x128xf32> to vector<8x128xf32>
    %13 = vector.extract_strided_slice %6 {offsets = [1, 0], sizes = [1, 128], strides = [1, 1]} : vector<4x128xf32> to vector<1x128xf32>
    %14 = vector.broadcast %13 : vector<1x128xf32> to vector<8x128xf32>
    %15 = arith.mulf %12, %14 : vector<8x128xf32>
    %16 = arith.addf %11, %15 : vector<8x128xf32>
    %17 = vector.extract_strided_slice %7 {offsets = [7, 0], sizes = [8, 128], strides = [1, 1]} : vector<16x128xf32> to vector<8x128xf32>
    %18 = vector.extract_strided_slice %6 {offsets = [2, 0], sizes = [1, 128], strides = [1, 1]} : vector<4x128xf32> to vector<1x128xf32>
    %19 = vector.broadcast %18 : vector<1x128xf32> to vector<8x128xf32>
    %20 = arith.mulf %17, %19 : vector<8x128xf32>
    %21 = arith.addf %16, %20 : vector<8x128xf32>
    %22 = vector.extract_strided_slice %7 {offsets = [8, 0], sizes = [8, 128], strides = [1, 1]} : vector<16x128xf32> to vector<8x128xf32>
    %23 = vector.extract_strided_slice %6 {offsets = [3, 0], sizes = [1, 128], strides = [1, 1]} : vector<4x128xf32> to vector<1x128xf32>
    %24 = vector.broadcast %23 : vector<1x128xf32> to vector<8x128xf32>
    %25 = arith.mulf %22, %24 : vector<8x128xf32>
    %26 = arith.addf %21, %25 : vector<8x128xf32>
    %27 = arith.negf %26 : vector<8x128xf32>
    %28 = math.exp %27 : vector<8x128xf32>
    %cst = arith.constant 1.000000e+00 : f32
    %29 = vector.broadcast %cst : f32 to vector<8x128xf32>
    %30 = arith.addf %29, %28 : vector<8x128xf32>
    %31 = arith.divf %29, %30 : vector<8x128xf32>
    %32 = arith.mulf %26, %31 : vector<8x128xf32>
    %c0_7 = arith.constant 0 : index
    %c0_8 = arith.constant 0 : index
    %c0_9 = arith.constant 0 : index
    %33 = vector.load %arg5[%c0_7, %c0_8, %c0_9] : memref<1x8x128xf32, #tpu.memory_space<vmem>>, vector<1x8x128xf32>
    %34 = vector.shape_cast %33 : vector<1x8x128xf32> to vector<8x128xf32>
    %35 = vector.shape_cast %32 : vector<8x128xf32> to vector<1x8x128xf32>
    tpu.vector_store %arg5[%c0_7, %c0_8, %c0_9], %35 {strides = array<i32>} : memref<1x8x128xf32, #tpu.memory_space<vmem>>, vector<1x8x128xf32>,
    %c0_10 = arith.constant 0 : index
    %c0_11 = arith.constant 0 : index
    %36 = vector.load %arg6[%c0_10, %c0_11] : memref<8x128xf32, #tpu.memory_space<vmem>>, vector<8x128xf32>
    tpu.vector_store %arg6[%c0_10, %c0_11], %4 {strides = array<i32>} : memref<8x128xf32, #tpu.memory_space<vmem>>, vector<8x128xf32>,
    return
  }
  func.func @transform_0(%arg0: i32, %arg1: i32, %arg2: i32) -> (i32, i32, i32) {
    %c0_i32 = arith.constant 0 : i32
    return %arg0, %arg2, %arg1 : i32, i32, i32
  }
  func.func @transform_1(%arg0: i32, %arg1: i32, %arg2: i32) -> (i32, i32) {
    %c0_i32 = arith.constant 0 : i32
    %c0_i32_0 = arith.constant 0 : i32
    return %c0_i32, %arg1 : i32, i32
  }
  func.func @transform_2(%arg0: i32, %arg1: i32, %arg2: i32) -> (i32, i32, i32) {
    %c0_i32 = arith.constant 0 : i32
    return %arg0, %arg2, %arg1 : i32, i32, i32
  }
}

</mosaic_0001>

<bundles_post_ra>
// kernel: tpu_custom_call.1
= control target key start
LH: loop header
LB: loop body
LE: loop exit
PB: predicated region body
PF: predicated region fallthrough
CT: control target
= control target key end

     0   :  { %s1165_s0 = inlined_call_operand.hbm [shape: f32[2,16,256], index: 0, kind: input, shape index: {}]   ;;  %s1166_s1 = inlined_call_operand.hbm [shape: f32[4,256], index: 1, kind: input, shape index: {}]   ;;  %s1167_s2 = inlined_call_operand.hbm [shape: f32[2,16,256], index: 2, kind: output, shape index: {}]  }
   0x1   :  { %1181 = sst [smem:[#allocation20_spill]] %s1167_s2 }
   0x2   :  { %7 = vsyncpa [#allocation4], 0 }
   0x3   :  { %9 = vsyncpa [#allocation4 + $0x1], 0 }
   0x4   :  { %10 = vsyncpa [#allocation7], 0 }
   0x5   :  { %12 = vsyncpa [#allocation7 + $0x1], 0 }
   0x6   :  { %13 = vsyncpa [#allocation5], 0 }
   0x7   :  { %15 = vsyncpa [#allocation5 + $0x1], 0  ;;  %s814_s9 = smov 0   ;;  %s816_s10 = smov 0  }
   0x8   :  { %s818_s11 = smov 0   ;;  %s820_s12 = smov 0  }
   0x9   :  { %s822_s13 = smov 0   ;;  %s824_s14 = smov 0  }
   0xa   :  { %s826_s15 = smov 0   ;;  %s828_s16 = smov 0  }
   0xb   :  { %s830_s17 = smov 0   ;;  %s832_s18 = smov 0  }
   0xc   :  { %s834_s19 = smov 0   ;;  %s836_s20 = smov 0  }
   0xd   :  { %s838_s21 = smov 0  }
   0xe LB: > { %1182 = sst [smem:[#allocation12_spill]] %s757_s12  ;;  %s436_s22 = sadd.s32 4294967295, %s793_s21   ;;  %s793_s21 = sphi %s838_s21, %s21_s21   ;;  %s789_s20 = sphi %s836_s20, %s1230_s20   ;;  %s785_s19 = sphi %s834_s19, %s1229_s19   ;;  %s781_s18 = sphi %s832_s18, %s1228_s18   ;;  %s777_s17 = sphi %s830_s17, %s1227_s17   ;;  %s773_s16 = sphi %s828_s16, %s1226_s16   ;;  %s769_s15 = sphi %s826_s15, %s1225_s15   ;;  %s765_s14 = sphi %s824_s14, %s1224_s14   ;;  %s761_s13 = sphi %s822_s13, %s1223_s13   ;;  %s757_s12 = sphi %s820_s12, %s1222_s12   ;;  %s753_s11 = sphi %s818_s11, %s1221_s11   ;;  %s749_s10 = sphi %s816_s10, %s1220_s10   ;;  %s745_s9 = sphi %s814_s9, %s1219_s9  }
   0xf   : > { %1183 = sst [smem:[#allocation13_spill]] %s773_s16  ;;  %s437_s23 = sadd.s32 4294967294, %s793_s21  }
  0x10   : > { %1184 = sst [smem:[#allocation14_spill]] %s777_s17  ;;  %s33_s24 = sadd.s32 1, %s781_s18 }
  0x11   : > { %s36_s25 = sadd.s32 1, %s785_s19  ;;  %p34_p0 = scmp.ge.s32.totalorder %s33_s24, 2 }
  0x12   : > { %s40_s26 = sadd.s32 1, %s789_s20  ;;  %p58_p1 = scmp.ne.s32.totalorder %s765_s14, %s761_s13 }
  0x13   : > { %s1232_s24 = smov (%p34_p0, %s33_s24), 0  ;;  %s1234_s25 = smov (!%p34_p0, %s36_s25), %s785_s19 }
  0x14   : > { %1185 = sst [smem:[#allocation15_spill]] %s1232_s24  ;;  %s45_s28 = ssub.s32 %s781_s18, %s1232_s24 }
  0x15   : > { %p1177_p2 = scmp.eq.s32.totalorder %s793_s21, 0  ;;  %p38_p3 = scmp.ge.s32.totalorder %s1234_s25, 2 }
  0x16   : > { %p64_p4 = scmp.ne.s32.totalorder %s761_s13, %s757_s12  ;;  %p904_p6 = scmp.eq.s32.totalorder %s436_s22, 0 }
  0x17   : > { %p900_p5 = por %p1177_p2, %p58_p1  ;;  %s1236_s25 = smov (%p38_p3, %s1234_s25), 0 }
  0x18   : > { %1188 = sst [smem:[#allocation16_spill]] %s1236_s25  ;;  %s1238_s26 = smov (!%p38_p3, %s40_s26), %s789_s20 }
  0x19   : > { %s913_s3 = ssub.s32 %s785_s19, %s1236_s25  ;;  %p920_p7 = por %p904_p6, %p64_p4 }
  0x1a   : > { %p42_p8 = scmp.ge.s32.totalorder %s1238_s26, 2  ;;  %p118_p10 = scmp.eq.s32.totalorder %s436_s22, 7 }
  0x1b   : > { %s1189_s4 = scalar_select %p920_p7, 1, 0 }
  0x1c   : > { %p124_p11 = scmp.eq.s32.totalorder %s437_s23, 7  ;;  %s1240_s26 = smov (%p42_p8, %s1238_s26), 0 }
  0x1d   : > { %1190 = sst [smem:[#allocation17_spill]] %s1240_s26  ;;  %p930_p12 = por %p118_p10, %p58_p1 }
  0x1e   : > { %p937_p13 = por %p124_p11, %p64_p4  ;;  %s44_s7 = ssub.s32 %s789_s20, %s1240_s26 }
  0x1f   : > { %s1191_s5 = scalar_select %p930_p12, 1, 0 }
  0x20   : > { %s1193_s6 = scalar_select %p937_p13, 1, 0 }
  0x21   : > { %1192 = sst [smem:[#allocation18_spill]] %s1191_s5  ;;  %s46_s8 = sor.u32 %s45_s28, %s44_s7 }
  0x22   : > { %1194 = sst [smem:[#allocation19_spill]] %s1193_s6  ;;  %p1176_p0 = scmp.lt.s32.totalorder %s793_s21, 8 }
  0x23   : > { %s48_s22 = sor.u32 %s913_s3, %s46_s8  ;;  %s144_s23 = sand.u32 1, %s765_s14  }
  0x24   : > { %p49_p3 = scmp.eq.s32.totalorder %s48_s22, 0  ;;  %s440_s27 = sshll.u32 %s144_s23, 3 }
  0x25   : > { %s441_s25 = sshll.u32 %s781_s18, 1  ;;  %s1195_s24 = sadd.s32 1, %s765_s14 }
  0x26   : > { %s950_s2 = scalar_select %p49_p3, %s765_s14, %s1195_s24  }
  0x27   : > { %s153_s12 = sadd.s32 %s785_s19, %s441_s25  ;;  %s442_s5 = sshll.u32 %s789_s20, 2 }
  0x28   : > { %s148_s17 = scalar_lea.vmem [#allocation3], %s440_s27  ;;  %s155_s6 = sadd.s32 %s442_s5, %s153_s12 }
  0x29   : > { %s159_s16 = sshll.u32 %s148_s17, 4  ;;  %s443_s26 = sshll.u32 %s155_s6, 7  ;;  %s954_s16 = int_to_ptr.vmem [resolvable:$true] %s159_s16 }
  0x2a   : > { %p960_p1 = pnand %p1176_p0, %p900_p5  ;;  %s967_s24 = scalar_lea.hbm %s1165_s0, %s443_s26 }
  0x2b   : > { %s145_s12 = scalar_lea.sflag [#allocation4], %s144_s23  ;;  %s591_s17 = scalar_lea.hbm %s967_s24, 128 }
  0x2c   : > { %p592_p10 = scmp.ne.s32.totalorder %s967_s24, %s591_s17  ;;  %p593_p5 = pneg %p960_p1 }
  0x2d   : > { %s596_s26 = scalar_lea.hbm %s1165_s0, 1024  ;;  %p597_p0 = scmp.lt.u32.totalorder %s967_s24, %s1165_s0 }
  0x2e   : > { %p594_p11 = pnand %p593_p5, %p592_p10  ;;  %p598_p2 = scmp.lt.u32.totalorder %s596_s26, %s591_s17 }
  0x2f   : > { %p600_p4 = scmp.lt.u32.totalorder %s591_s17, %s967_s24 }
  0x30   : > { %p595_p3 = pneg %p594_p11  ;;  %p599_p9 = por %p598_p2, %p597_p0 }
  0x32   : > { %p601_p8 = por %p600_p4, %p599_p9 }
  0x34   : > { %p602_p13 = pnand %p601_p8, %p595_p3 }
  0x36   : > { %605 = shalt.err (!%p602_p13)
}
  0x37   : > { %s606_s6 = scalar_lea.vmem %s954_s16, 128  ;;  %s795_s22 = smov [#allocation3]  }
  0x38   : > { %p607_p10 = scmp.ne.s32.totalorder %s954_s16, %s606_s6  ;;  %s611_s23 = sshll.u32 %s795_s22, 4  ;;  %s612_s23 = int_to_ptr.vmem [resolvable:$false] %s611_s23 }
  0x39   : > { %s613_s7 = scalar_lea.vmem %s612_s23, 256  ;;  %p614_p7 = scmp.lt.s32.totalorder %s954_s16, %s612_s23 }
  0x3a   : > { %p609_p11 = pnand %p607_p10, %p593_p5  ;;  %p615_p2 = scmp.lt.s32.totalorder %s613_s7, %s606_s6 }
  0x3c   : > { %p610_p12 = pneg %p609_p11  ;;  %p616_p0 = por %p615_p2, %p614_p7 }
  0x3e   : > { %p617_p9 = pnand %p616_p0, %p610_p12 }
  0x40   : > { %620 = shalt.err (!%p617_p9)
}
  0x41   : > { %468 = dma.hbm_to_vmem [thread:$0]  (!%p960_p1), %s967_s24, 128, %s954_s16, %s145_s12  }
  0x42   : > { %p1197_p7 = scmp.lt.s32.totalorder %s793_s21, 9  ;;  %p1198_p12 = scmp.ge.s32.totalorder %s793_s21, 1 }
  0x43   : > { %s77_s8 = sadd.s32 1, %s753_s11  ;;  %p1200_p4 = scmp.eq.s32.totalorder %s913_s3, 0 }
  0x44   : > { %p1000_p13 = pnand %p1198_p12, %p1197_p7  ;;  %p84_p8 = scmp.ne.s32.totalorder %s753_s11, %s749_s10 }
  0x45   : > { %s1008_s17 = scalar_select %p1200_p4, %s753_s11, %s77_s8  }
  0x46   : > { %p90_p5 = scmp.ne.s32.totalorder %s749_s10, %s745_s9  ;;  %s166_s25 = sand.u32 1, %s753_s11  }
  0x47   : > { %s445_s27 = sshll.u32 %s785_s19, 6  ;;  %p1201_p3 = scmp.eq.s32.totalorder %s793_s21, 0 }
  0x48   : > { %p1020_p11 = por %p90_p5, %p904_p6  ;;  %s444_s16 = sshll.u32 %s166_s25, 2 }
  0x49   : > { %p86_p10 = por %p84_p8, %p1201_p3  ;;  %s1027_s29 = scalar_lea.hbm %s1166_s1, %s445_s27 }
  0x4a   : > { %s1202_s26 = scalar_select %p1020_p11, 1, 0 }
  0x4b   : > { %s170_s9 = scalar_lea.vmem [#allocation6], %s444_s16  ;;  %p1203_p1 = scmp.lt.s32.totalorder %s793_s21, 8 }
  0x4c   : > { %s177_s3 = sshll.u32 %s170_s9, 4  ;;  %s167_s30 = scalar_lea.sflag [#allocation7], %s166_s25  ;;  %s1035_s3 = int_to_ptr.vmem [resolvable:$true] %s177_s3 }
  0x4d   : > { %p1031_p2 = pnand %p1203_p1, %p86_p10  ;;  %s621_s6 = scalar_lea.hbm %s1027_s29, 64 }
  0x4e   : > { %p622_p6 = scmp.ne.s32.totalorder %s1027_s29, %s621_s6  ;;  %s626_s7 = scalar_lea.hbm %s1166_s1, 128 }
  0x4f   : > { %p623_p0 = pneg %p1031_p2  ;;  %p627_p12 = scmp.lt.u32.totalorder %s1027_s29, %s1166_s1 }
  0x50   : > { %p628_p4 = scmp.lt.u32.totalorder %s626_s7, %s621_s6  ;;  %p630_p5 = scmp.lt.u32.totalorder %s621_s6, %s1027_s29 }
  0x51   : > { %p624_p9 = pnand %p623_p0, %p622_p6 }
  0x52   : > { %p629_p8 = por %p628_p4, %p627_p12 }
  0x53   : > { %p625_p7 = pneg %p624_p9 }
  0x54   : > { %p631_p3 = por %p630_p5, %p629_p8 }
  0x56   : > { %p632_p10 = pnand %p631_p3, %p625_p7 }
  0x58   : > { %635 = shalt.err (!%p632_p10)
}
  0x59   : > { %s636_s25 = scalar_lea.vmem %s1035_s3, 64  ;;  %s796_s16 = smov [#allocation6]  }
  0x5a   : > { %p637_p1 = scmp.ne.s32.totalorder %s1035_s3, %s636_s25  ;;  %s641_s24 = sshll.u32 %s796_s16, 4  ;;  %s642_s24 = int_to_ptr.vmem [resolvable:$false] %s641_s24 }
  0x5b   : > { %s643_s12 = scalar_lea.vmem %s642_s24, 128  ;;  %p644_p11 = scmp.lt.s32.totalorder %s1035_s3, %s642_s24 }
  0x5c   : > { %p639_p6 = pnand %p637_p1, %p623_p0  ;;  %p645_p12 = scmp.lt.s32.totalorder %s643_s12, %s636_s25 }
  0x5e   : > { %p640_p9 = pneg %p639_p6  ;;  %p646_p4 = por %p645_p12, %p644_p11 }
  0x60   : > { %p647_p8 = pnand %p646_p4, %p640_p9 }
  0x62   : > { %650 = shalt.err (!%p647_p8)
}
  0x63   : > { %471 = dma.hbm_to_vmem [thread:$0]  (!%p1031_p2), %s1027_s29, 64, %s1035_s3, %s167_s30  }
  0x64   : > { %186 = sbr.rel (%p1000_p13) target bundleno = 182 (0xb6), region = 28  ;;  %s1065_s9 = sand.u32 (!%p1000_p13), 1, %s761_s13  }
  0x65   : > { %s447_s6 = sshll.u32 (!%p1000_p13), %s1065_s9, 3  ;;  %s189_s22 = scalar_lea.sflag (!%p1000_p13), [#allocation4], %s1065_s9 }
  0x66   : > { %s192_s23 = scalar_lea.vmem (!%p1000_p13), [#allocation3], %s447_s6  ;;  %p1205_p11 = scmp.ne.s32.totalorder (!%p1000_p13), %s1189_s4, 0 }
  0x6b   : > { %732 = dma.done.wait (%p1205_p11), %s189_s22, 128  }
  0x6c   : > { %734 = vsyncadd (%p1205_p11), %s189_s22, 4294967168  ;;  %s197_s29 = sand.u32 1, %s749_s10   ;;  %p1206_p13 = scmp.ne.s32.totalorder %s1202_s26, 0 }
  0x6d   : > { %s448_s3 = sshll.u32 %s197_s29, 2  ;;  %s198_s28 = scalar_lea.sflag [#allocation7], %s197_s29 }
  0x6e   : > { %s201_s5 = scalar_lea.vmem [#allocation6], %s448_s3 }
  0x6f   : > { %736 = dma.done.wait (%p1206_p13), %s198_s28, 64  }
  0x70   : > { %738 = vsyncadd (%p1206_p13), %s198_s28, 4294967232  ;;  %s1078_s30 = scalar_lea.vmem [#allocation8], %s447_s6  ;;  %p450_p2 = scmp.ne.s32.totalorder %s769_s15, 0 }
  0x71   : > { %v797_v0 = vmov (!%p450_p2), 0.0  }
  0x72   : > { %230 = sbr.rel (%p450_p2) target bundleno = 121 (0x79), region = 40  ;;  %231 = vst [vmem:[#allocation2] sm:$0xff] (!%p450_p2), %v797_v0 }
  0x79 PF: > { %v232_v1 = vld [vmem:[%s192_s23] sm:$0xff]  ;;  %v233_v2 = vld [vmem:[#allocation2] sm:$0xff]  ;;  %v235_v3 = vlaneseq  ;;  %v234_v5 = vld [vmem:[%s201_s5] sm:$0xf]  ;;  %vm249_vm0 = vcmask 1046528   ;;  %vm265_vm1 = vcmask 1045504  }
  0x7a   : > { %299 = vst [vmem:[#allocation2] sm:$0xff] %v232_v1  ;;  %s1207_s4 = sld [smem:[#allocation13_spill]]  ;;  %s1208_s26 = sld [smem:[#allocation14_spill]] }
  0x7b   : > { %v236_v4 = vshrl.u32 %v235_v3, 7  ;;  %s454_s7 = sshll.u32 %s769_s15, 1  ;;  %s1209_s27 = sld [smem:[#allocation18_spill]] }
  0x7c   : > { %s318_s12 = sshll.u32 %s1078_s30, 4  ;;  %s1210_s23 = sld [smem:[#allocation20_spill]]  ;;  %s1090_s12 = int_to_ptr.vmem [resolvable:$true] %s318_s12 }
  0x7d   : > { %v237_v6 = vsub.s32 0, %v236_v4  ;;  %v243_v7 = vsub.s32 1, %v236_v4  ;;  %v259_v8 = vsub.s32 2, %v236_v4  ;;  %v275_v9 = vsub.s32 3, %v236_v4  ;;  %s301_s15 = scalar_lea.sflag [#allocation5], %s1065_s9  ;;  %s651_s3 = scalar_lea.vmem %s1090_s12, 128 }
  0x7e   : > { %p652_p0 = scmp.ne.s32.totalorder %s1090_s12, %s651_s3  ;;  %s798_s28 = smov [#allocation8]  }
  0x7f   : > { %v238_v10 = vrot.slane %v234_v5, %v237_v6  ;;  %v244_v11 = vrot.slane %v234_v5, %v243_v7  ;;  %v260_v12 = vrot.slane %v234_v5, %v259_v8  ;;  %v276_v13 = vrot.slane %v234_v5, %v275_v9  ;;  %s655_s5 = sshll.u32 %s798_s28, 4  ;;  %s656_s5 = int_to_ptr.vmem [resolvable:$false] %s655_s5 }
  0x80   : > { %s312_s8 = sadd.s32 %s1207_s4, %s454_s7  ;;  %s455_s25 = sshll.u32 %s1208_s26, 2 }
  0x81   : > { %v245_v14 = vmul.f32 %v244_v11, %v233_v2  ;;  %v246_v15 = vmul.f32 %v244_v11, %v232_v1  ;;  %v261_v16 = vmul.f32 %v260_v12, %v233_v2  ;;  %v239_v17 = vmul.f32 %v238_v10, %v233_v2  ;;  %s314_s16 = sadd.s32 %s455_s25, %s312_s8  ;;  %p1211_p7 = scmp.ne.s32.totalorder %s1209_s27, 0 }
  0x82   : > { %v262_v18 = vmul.f32 %v260_v12, %v232_v1  ;;  %v277_v19 = vmul.f32 %v276_v13, %v232_v1  ;;  %v240_v20 = vmul.f32 %v238_v10, %v232_v1  ;;  %s456_s24 = sshll.u32 %s314_s16, 7  ;;  %s657_s4 = scalar_lea.vmem %s656_s5, 256 }
  0x83   : > { %v250_v21 = vrot.slane %v245_v14, 1  ;;  %v251_v22 = vrot.slane %v246_v15, 1  ;;  %v266_v23 = vrot.slane %v261_v16, 2  ;;  %s1088_s29 = scalar_lea.hbm %s1210_s23, %s456_s24  ;;  %p653_p5 = pnand %p652_p0, %p1211_p7 }
  0x84   : > { %v267_v24 = vrot.slane %v262_v18, 2  ;;  %v279_v26 = vrot.slane %v277_v19, 3  ;;  %p658_p10 = scmp.lt.s32.totalorder %s1090_s12, %s656_s5  ;;  %p659_p1 = scmp.lt.s32.totalorder %s657_s4, %s651_s3 }
  0x85   : > { %v252_v25 = vsel %vm249_vm0, %v250_v21, %v251_v22  ;;  %v256_v27 = vadd.f32 %v251_v22, %v240_v20  ;;  %p654_p3 = pneg %p653_p5 }
  0x86   : > { %v255_v28 = vadd.f32 %v252_v25, %v239_v17  ;;  %v268_v29 = vsel %vm265_vm1, %v266_v23, %v267_v24  ;;  %p660_p6 = por %p659_p1, %p658_p10 }
  0x87   : > { %v272_v30 = vadd.f32 %v267_v24, %v256_v27 }
  0x88   : > { %v271_v31 = vadd.f32 %v268_v29, %v255_v28  ;;  %p661_p9 = pnand %p660_p6, %p654_p3 }
  0x89   : > { %v282_v32 = vadd.f32 %v279_v26, %v272_v30 }
  0x8a   : > { %v281_v33 = vadd.f32 %v279_v26, %v271_v31 }
  0x8b   : > { %v452_v34 = vmul.f32 -1.442695, %v282_v32 }
  0x8c   : > { %v451_v35 = vmul.f32 -1.442695, %v281_v33 }
  0x8d   : > { %583 = vpow2.f32 %v452_v34 }
  0x8e   : > { %585 = vpow2.f32 %v451_v35 }
  0x97   : > { %v584_v36 = vpop.eup %583 }
  0x98   : > { %v586_v37 = vpop.eup %585  ;;  %v290_v38 = vadd.f32 1.0, %v584_v36 }
  0x99   : > { %v289_v39 = vadd.f32 1.0, %v586_v37 }
  0x9a   : > { %587 = vrcp.f32 %v290_v38 }
  0x9b   : > { %589 = vrcp.f32 %v289_v39 }
  0xa4   : > { %v588_v40 = vpop.eup %587 }
  0xa5   : > { %v590_v41 = vpop.eup %589  ;;  %v296_v42 = vmul.f32 %v588_v40, %v282_v32 }
  0xa6   : > { %v295_v43 = vmul.f32 %v590_v41, %v281_v33 }
  0xa7   : > { %298 = vst [vmem:[%s1078_s30 + $0x3] sm:$0x1f] %v296_v42 }
  0xa8   : > { %297 = vst [vmem:[%s1078_s30 - $0x5] sm:$0xe0] %v295_v43 }
  0xa9   : > { %664 = shalt.err (!%p661_p9)
}
  0xaa   : > { %s665_s9 = scalar_lea.hbm %s1088_s29, 128  ;;  %s669_s7 = scalar_lea.hbm %s1210_s23, 1024 }
  0xab   : > { %p666_p12 = scmp.ne.s32.totalorder %s1088_s29, %s665_s9  ;;  %p670_p11 = scmp.lt.u32.totalorder %s1088_s29, %s1210_s23 }
  0xac   : > { %p671_p13 = scmp.lt.u32.totalorder %s669_s7, %s665_s9  ;;  %p673_p0 = scmp.lt.u32.totalorder %s665_s9, %s1088_s29 }
  0xad   : > { %p667_p4 = pnand %p666_p12, %p1211_p7 }
  0xae   : > { %p672_p2 = por %p671_p13, %p670_p11 }
  0xaf   : > { %p668_p8 = pneg %p667_p4 }
  0xb0   : > { %p674_p5 = por %p673_p0, %p672_p2 }
  0xb2   : > { %p675_p3 = pnand %p674_p5, %p668_p8 }
  0xb4   : > { %678 = shalt.err (!%p675_p3)
}
  0xb5   : > { %463 = dma.vmem_to_hbm [thread:$0]  (%p1211_p7), %s1090_s12, 128, %s1088_s29, %s301_s15  }
  0xb6 PF: > { %s1212_s16 = sld [smem:[#allocation12_spill]]  ;;  %s1213_s24 = sld [smem:[#allocation19_spill]] }
  0xb7   : > { %p477_p10 = scmp.ge.s32.totalorder %s793_s21, 2 }
  0xbc   : > { %s330_s6 = sand.u32 1, %s1212_s16   ;;  %p1214_p1 = scmp.ne.s32.totalorder %s1213_s24, 0 }
  0xbd   : > { %s331_s22 = scalar_lea.sflag [#allocation5], %s330_s6 }
  0xbe   : > { %p473_p6 = pnand %p477_p10, %p1214_p1 }
  0xc0   : > { %740 = dma.done.wait (!%p473_p6), %s331_s22, 128  }
  0xc1   : > { %742 = vsyncadd (!%p473_p6), %s331_s22, 4294967168  ;;  %s21_s21 = sadd.s32 1, %s793_s21   ;;  %s1216_s27 = sld [smem:[#allocation15_spill]] }
  0xc2   : > { %p1121_p9 = scmp.ge.s32.totalorder %s21_s21, 10   ;;  %s1217_s29 = sld [smem:[#allocation16_spill]] }
  0xc3   : > { %s1218_s28 = sld [smem:[#allocation17_spill]]  ;;  %s1219_s9 = smov %s749_s10 }
  0xc4   : > { %s1220_s10 = smov %s753_s11  ;;  %s1221_s11 = smov %s1008_s17 }
  0xc5   : > { %s1222_s12 = smov %s761_s13  ;;  %s1223_s13 = smov %s765_s14 }
  0xc6   : > { %s1224_s14 = smov %s950_s2  ;;  %s1225_s15 = smov %s781_s18 }
  0xc7   : > { %s1226_s16 = smov %s785_s19  ;;  %s1227_s17 = smov %s789_s20 }
  0xc8   : > { %s1228_s18 = smov %s1216_s27  ;;  %s1229_s19 = smov %s1217_s29 }
  0xc9   : > { %s1230_s20 = smov %s1218_s28  ;;  %20 = sbr.rel (!%p1121_p9) target bundleno = 14 (0xe), region = 90 }
  0xd0   :  { %336 = vsyncpa [#allocation4], 1 }
  0xd1   :  { %338 = vsyncpa [#allocation4 + $0x1], 1 }
  0xd2   :  { %339 = vsyncpa [#allocation7], 1 }
  0xd3   :  { %341 = vsyncpa [#allocation7 + $0x1], 1 }
  0xd4   :  { %342 = vsyncpa [#allocation5], 1 }
  0xd5   :  { %344 = vsyncpa [#allocation5 + $0x1], 1 }

</bundles_post_ra>
